<compile_context>
chip_gen: v7x
topology: tpu7x:2x2x1
jax: 0.10.0
libtpu: 0.0.40
codegen_flags: <defaults>
</compile_context>

<pallas_src>
import functools
import math

import jax
import jax.numpy as jnp
from jax import lax
from jax.experimental import pallas as pl
from jax.experimental.pallas import tpu as pltpu


def _vmem_capacity_bytes():
    # Generation-aware VMEM size (v5e/v6e: 128 MiB, v7x: 64 MiB per TensorCore).
    try:
        return int(pltpu.get_tpu_info().vmem_capacity_bytes)
    except Exception:
        return 64 << 20  # conservative fallback (v7x per-TC)


def _choose_row_tile(N, Ho, Wo, C, C3, mm_itemsize):
    """Pick TH (output rows per grid step) from a per-step VMEM working-set model."""
    per_row = (
        2 * 4 * C * (4 * Wo + 2)          # double-buffered parity-plane input blocks
        + 2 * 4 * Wo * (C3 + C)           # double-buffered output blocks
        + 4 * Wo * (C3 + C + 8 * C)       # acc + pool max + in-kernel plane/mask copies
        + 2 * mm_itemsize * Wo * 9 * C    # (M, 9C) tap slab (+ transient tap copies)
    )
    budget = int(0.55 * _vmem_capacity_bytes())
    th_vmem = max(1, budget // max(per_row, 1))
    th_tgt = max(1, -(-2048 // Wo))       # ~2048 output positions/step amortizes overhead
    th = max(1, min(Ho, th_vmem, th_tgt))
    # Prefer M = TH*Wo to be a multiple of 256 (MXU-friendly) when it costs < 2x rows.
    if (th * Wo) % 256:
        g = 256 // math.gcd(256, Wo)
        th_al = (th // g) * g
        if th_al >= g and th_al * 2 >= th:
            th = th_al
    # Keep >= 2 grid steps so both TensorCores get work on dual-TC chips (v7x).
    if N * (-(-Ho // th)) < 2 and Ho >= 2:
        th = -(-Ho // 2)
    n_tiles = -(-Ho // th)
    th = -(-Ho // n_tiles)                # rebalance so the last tile is not tiny
    n_tiles = -(-Ho // th)
    return th, n_tiles, per_row


# ---------------------------------------------------------------------------
# Pallas kernel: one (batch, output-row tile) step.
# ---------------------------------------------------------------------------
def _downsample_kernel(ee_b_ref, ee_h_ref, eo_b_ref, eo_h_ref, oe_ref, oo_ref,
                       w_ref, b_ref, conv_ref, pool_ref):
    TH = oe_ref.shape[1]          # output rows in this tile
    Wo = oo_ref.shape[2]          # output cols
    C = oo_ref.shape[3]           # input channels
    M = TH * Wo

    # Even-parity planes for this row tile: TH body rows + 1 halo row (VMEM concat).
    ee = jnp.concatenate([ee_b_ref[0], ee_h_ref[0]], axis=0)   # (TH+1, Wo+1, C)
    eo = jnp.concatenate([eo_b_ref[0], eo_h_ref[0]], axis=0)   # (TH+1, Wo,   C)
    oe = oe_ref[0]                                             # (TH,   Wo+1, C)
    oo = oo_ref[0]                                             # (TH,   Wo,   C)

    def taps(a_ee, a_eo, a_oe, a_oo):
        # 3x3 / stride-2 window taps in (dy, dx) row-major order.
        return [
            a_ee[0:TH, 0:Wo],     a_eo[0:TH, :],     a_ee[0:TH, 1:Wo + 1],
            a_oe[:, 0:Wo],        a_oo,              a_oe[:, 1:Wo + 1],
            a_ee[1:TH + 1, 0:Wo], a_eo[1:TH + 1, :], a_ee[1:TH + 1, 1:Wo + 1],
        ]

    # ---- conv branch: ONE long-K MXU matmul (M, 9C) x (9C, C3), BN scale folded ----
    mm_dtype = w_ref.dtype
    pieces = [t.reshape(M, C) for t in taps(ee, eo, oe, oo)]
    if mm_dtype != jnp.float32:
        pieces = [p.astype(mm_dtype) for p in pieces]
    slab = jnp.concatenate(pieces, axis=-1)                    # (M, 9C) tap slab
    acc = jnp.dot(slab, w_ref[...], preferred_element_type=jnp.float32)
    acc = jnp.maximum(acc + b_ref[...], 0.0)                   # BN bias + ReLU (f32)
    conv_ref[0, 0] = acc.astype(conv_ref.dtype)                # direct store, no concat

    # ---- pool branch: -inf padding semantics, 9-tap max ----
    first_tile = pl.program_id(1) == 0                         # only tile 0 sees top pad
    neg = jnp.float32(-jnp.inf)
    r_ee = lax.broadcasted_iota(jnp.int32, ee.shape, 0)
    c_ee = lax.broadcasted_iota(jnp.int32, ee.shape, 1)
    ee_m = jnp.where(((r_ee == 0) & first_tile) | (c_ee == 0), neg, ee)
    r_eo = lax.broadcasted_iota(jnp.int32, eo.shape, 0)
    eo_m = jnp.where((r_eo == 0) & first_tile, neg, eo)
    c_oe = lax.broadcasted_iota(jnp.int32, oe.shape, 1)
    oe_m = jnp.where(c_oe == 0, neg, oe)

    pool_taps = taps(ee_m, eo_m, oe_m, oo)
    pmax = pool_taps[0]
    for p in pool_taps[1:]:
        pmax = jnp.maximum(pmax, p)
    pool_ref[0, 0] = pmax.reshape(M, C).astype(pool_ref.dtype)


# ---------------------------------------------------------------------------
# pallas_call wrapper.
# ---------------------------------------------------------------------------
def _fused_downsample_call(ee, eo, oe, oo, w, bias, TH, n_tiles, per_row):
    N = oo.shape[0]
    Wo = oo.shape[2]
    C = oo.shape[3]
    C3 = w.shape[1]
    M = TH * Wo
    Ho_pad = TH * n_tiles

    flops = 2 * N * n_tiles * M * 9 * C * C3
    in_bytes = 4 * C * N * ((Ho_pad + 1) * (2 * Wo + 1) + Ho_pad * (2 * Wo + 1))
    out_bytes = 4 * N * n_tiles * M * (C3 + C)
    cost = pl.CostEstimate(flops=flops, transcendentals=0,
                           bytes_accessed=in_bytes + out_bytes + 4 * (9 * C * C3 + C3))

    est = per_row * TH + 4 * (9 * C * C3 + C3)
    vmem_limit = int(min(int(0.78 * _vmem_capacity_bytes()),
                         max(32 << 20, 2 * est)))

    return pl.pallas_call(
        _downsample_kernel,
        out_shape=(jax.ShapeDtypeStruct((N, n_tiles, M, C3), jnp.float32),
                   jax.ShapeDtypeStruct((N, n_tiles, M, C), jnp.float32)),
        grid=(N, n_tiles),
        in_specs=[
            pl.BlockSpec((1, TH, Wo + 1, C), lambda n, t: (n, t, 0, 0)),          # ee body
            pl.BlockSpec((1, 1, Wo + 1, C), lambda n, t: (n, t * TH + TH, 0, 0)), # ee halo row
            pl.BlockSpec((1, TH, Wo, C), lambda n, t: (n, t, 0, 0)),              # eo body
            pl.BlockSpec((1, 1, Wo, C), lambda n, t: (n, t * TH + TH, 0, 0)),     # eo halo row
            pl.BlockSpec((1, TH, Wo + 1, C), lambda n, t: (n, t, 0, 0)),          # oe
            pl.BlockSpec((1, TH, Wo, C), lambda n, t: (n, t, 0, 0)),              # oo
            # TODO(synk): pipeline_mode=pl.Buffered(1) on the two constant blocks below
            # would save one weight-sized VMEM buffer; skipped for portability.
            pl.BlockSpec((9 * C, C3), lambda n, t: (0, 0)),                       # folded weights
            pl.BlockSpec((1, C3), lambda n, t: (0, 0)),                           # folded bias
        ],
        out_specs=[
            pl.BlockSpec((1, 1, M, C3), lambda n, t: (n, t, 0, 0)),               # conv branch
            pl.BlockSpec((1, 1, M, C), lambda n, t: (n, t, 0, 0)),                # pool branch
        ],
        compiler_params=pltpu.CompilerParams(
            dimension_semantics=("parallel", "parallel"),
            vmem_limit_bytes=vmem_limit),
        cost_estimate=cost,
    )(ee, ee, eo, eo, oe, oo, w, bias)


# ---------------------------------------------------------------------------
# Public module (NCHW in / NCHW out, like the PyTorch module).
# ---------------------------------------------------------------------------
@functools.partial(jax.jit, static_argnames=("use_bf16_matmul",))
def downsample_module(x_nchw, conv_w, bn_gamma, bn_beta, bn_mean, bn_var,
                      eps=1e-3, use_bf16_matmul=False):
    N, C, H, W = x_nchw.shape
    C3 = conv_w.shape[0]
    if H % 2 or W % 2:
        raise NotImplementedError("even spatial sizes only")  # TODO(synk): odd H/W
    Ho, Wo = H // 2, W // 2

    # NCHW -> NHWC (channels on lanes); zero-pad once for the conv.
    x = jnp.transpose(x_nchw, (0, 2, 3, 1)).astype(jnp.float32)
    xp = jnp.pad(x, ((0, 0), (1, 1), (1, 1), (0, 0)))

    # Row/col parity planes of the padded input (~1x input HBM traffic).
    ee = xp[:, 0::2, 0::2, :]                    # (N, Ho+1, Wo+1, C)
    eo = xp[:, 0::2, 1::2, :][:, :, :Wo, :]      # (N, Ho+1, Wo,   C)
    oe = xp[:, 1::2, 0::2, :][:, :Ho, :, :]      # (N, Ho,   Wo+1, C)
    oo = xp[:, 1::2, 1::2, :][:, :Ho, :Wo, :]    # (N, Ho,   Wo,   C)

    mm_itemsize = 2 if use_bf16_matmul else 4
    TH, n_tiles, per_row = _choose_row_tile(N, Ho, Wo, C, C3, mm_itemsize)
    Ho_pad = TH * n_tiles
    if Ho_pad > Ho:
        pad = ((0, 0), (0, Ho_pad - Ho), (0, 0), (0, 0))
        ee, eo, oe, oo = (jnp.pad(a, pad) for a in (ee, eo, oe, oo))

    # Fold inference BatchNorm scale into the (9C, C3) weight slab; bias stays in-kernel.
    scale = bn_gamma / jnp.sqrt(bn_var + eps)                       # (C3,)
    bias = (bn_beta - bn_mean * scale).reshape(1, C3).astype(jnp.float32)
    w9 = jnp.transpose(conv_w, (2, 3, 1, 0)).reshape(9 * C, C3)     # rows = (ky, kx, cin)
    w9 = w9 * scale[None, :]
    w9 = w9.astype(jnp.bfloat16 if use_bf16_matmul else jnp.float32)

    conv_out, pool_out = _fused_downsample_call(ee, eo, oe, oo, w9, bias,
                                                TH, n_tiles, per_row)
    x1 = conv_out.reshape(N, Ho_pad, Wo, C3)[:, :Ho]                # drop pad rows
    x2 = pool_out.reshape(N, Ho_pad, Wo, C)[:, :Ho]
    return jnp.concatenate([jnp.transpose(x1, (0, 3, 1, 2)),        # NHWC -> NCHW + concat
                            jnp.transpose(x2, (0, 3, 1, 2))], axis=1)


# ---------------------------------------------------------------------------
# Pure-JAX reference for verification.
# ---------------------------------------------------------------------------
def _reference(x_nchw, conv_w, bn_gamma, bn_beta, bn_mean, bn_var, eps=1e-3):
    y = lax.conv_general_dilated(
        x_nchw, conv_w, window_strides=(2, 2), padding=((1, 1), (1, 1)),
        dimension_numbers=("NCHW", "OIHW", "NCHW"))
    scale = bn_gamma / jnp.sqrt(bn_var + eps)
    bias = bn_beta - bn_mean * scale
    y = y * scale[None, :, None, None] + bias[None, :, None, None]
    x1 = jnp.maximum(y, 0.0)
    x2 = lax.reduce_window(
        x_nchw, -jnp.inf, lax.max,
        window_dimensions=(1, 1, 3, 3), window_strides=(1, 1, 2, 2),
        padding=((0, 0), (0, 0), (1, 1), (1, 1)))
    return jnp.concatenate([x1, x2], axis=1)


if __name__ == "__main__":
    key = jax.random.PRNGKey(0)
    k1, k2, k3, k4, k5, k6 = jax.random.split(key, 6)

    N, C, H, W = 2, 4, 16, 16
    C3 = 8

    x = jax.random.normal(k1, (N, C, H, W), dtype=jnp.float32)
    conv_w = jax.random.normal(k2, (C3, C, 3, 3), dtype=jnp.float32) * 0.1
    bn_gamma = 1.0 + 0.1 * jax.random.normal(k3, (C3,), dtype=jnp.float32)
    bn_beta = 0.1 * jax.random.normal(k4, (C3,), dtype=jnp.float32)
    bn_mean = 0.1 * jax.random.normal(k5, (C3,), dtype=jnp.float32)
    bn_var = jnp.abs(jax.random.normal(k6, (C3,), dtype=jnp.float32)) + 0.5

    out = downsample_module(x, conv_w, bn_gamma, bn_beta, bn_mean, bn_var)
    out = jax.block_until_ready(out)

    ref = _reference(x, conv_w, bn_gamma, bn_beta, bn_mean, bn_var)
    assert out.shape == (N, C3 + C, H // 2, W // 2), out.shape
    err = float(jnp.max(jnp.abs(out - ref)))
    assert jnp.allclose(out, ref, atol=1e-4, rtol=1e-4), err

    print("KERNEL_OK")
</pallas_src>

<mosaic_0001>
module attributes {stable_mosaic.version = 11 : i64} {
  func.func @_downsample_kernel(%arg0: i32, %arg1: i32, %arg2: memref<1x8x9x4xf32, #tpu.memory_space<vmem>>, %arg3: memref<1x1x9x4xf32, #tpu.memory_space<vmem>>, %arg4: memref<1x8x8x4xf32, #tpu.memory_space<vmem>>, %arg5: memref<1x1x8x4xf32, #tpu.memory_space<vmem>>, %arg6: memref<1x8x9x4xf32, #tpu.memory_space<vmem>>, %arg7: memref<1x8x8x4xf32, #tpu.memory_space<vmem>>, %arg8: memref<36x8xf32, #tpu.memory_space<vmem>>, %arg9: memref<1x8xf32, #tpu.memory_space<vmem>>, %arg10: memref<1x1x64x8xf32, #tpu.memory_space<vmem>>, %arg11: memref<1x1x64x4xf32, #tpu.memory_space<vmem>>) attributes {dimension_semantics = [#tpu.dimension_semantics<parallel>, #tpu.dimension_semantics<parallel>], iteration_bounds = array<i64: 2, 1>, scalar_prefetch = 0 : i64, scratch_operands = 0 : i64, tpu.core_type = #tpu.core_type<tc>, window_params = [{transform_indices = @transform_0, window_bounds = array<i64: 1, 8, 9, 4>}, {transform_indices = @transform_1, window_bounds = array<i64: 1, 1, 9, 4>}, {transform_indices = @transform_2, window_bounds = array<i64: 1, 8, 8, 4>}, {transform_indices = @transform_3, window_bounds = array<i64: 1, 1, 8, 4>}, {transform_indices = @transform_4, window_bounds = array<i64: 1, 8, 9, 4>}, {transform_indices = @transform_5, window_bounds = array<i64: 1, 8, 8, 4>}, {pipeline_mode = #tpu.pipeline_mode<synchronous>, transform_indices = @transform_6, window_bounds = array<i64: 36, 8>}, {pipeline_mode = #tpu.pipeline_mode<synchronous>, transform_indices = @transform_7, window_bounds = array<i64: 1, 8>}, {transform_indices = @transform_8, window_bounds = array<i64: 1, 1, 64, 8>}, {transform_indices = @transform_9, window_bounds = array<i64: 1, 1, 64, 4>}]} {
    %c0 = arith.constant 0 : index
    %c0_0 = arith.constant 0 : index
    %c0_1 = arith.constant 0 : index
    %c0_2 = arith.constant 0 : index
    %0 = vector.load %arg2[%c0, %c0_0, %c0_1, %c0_2] : memref<1x8x9x4xf32, #tpu.memory_space<vmem>>, vector<1x8x9x4xf32>
    %1 = vector.shape_cast %0 : vector<1x8x9x4xf32> to vector<8x9x4xf32>
    %c0_3 = arith.constant 0 : index
    %c0_4 = arith.constant 0 : index
    %c0_5 = arith.constant 0 : index
    %c0_6 = arith.constant 0 : index
    %2 = vector.load %arg3[%c0_3, %c0_4, %c0_5, %c0_6] : memref<1x1x9x4xf32, #tpu.memory_space<vmem>>, vector<1x1x9x4xf32>
    %3 = vector.shape_cast %2 : vector<1x1x9x4xf32> to vector<1x9x4xf32>
    %4 = tpu.concatenate %1, %3 in 0 : vector<8x9x4xf32>, vector<1x9x4xf32> -> vector<9x9x4xf32>
    %c0_7 = arith.constant 0 : index
    %c0_8 = arith.constant 0 : index
    %c0_9 = arith.constant 0 : index
    %c0_10 = arith.constant 0 : index
    %5 = vector.load %arg4[%c0_7, %c0_8, %c0_9, %c0_10] : memref<1x8x8x4xf32, #tpu.memory_space<vmem>>, vector<1x8x8x4xf32>
    %6 = vector.shape_cast %5 : vector<1x8x8x4xf32> to vector<8x8x4xf32>
    %c0_11 = arith.constant 0 : index
    %c0_12 = arith.constant 0 : index
    %c0_13 = arith.constant 0 : index
    %c0_14 = arith.constant 0 : index
    %7 = vector.load %arg5[%c0_11, %c0_12, %c0_13, %c0_14] : memref<1x1x8x4xf32, #tpu.memory_space<vmem>>, vector<1x1x8x4xf32>
    %8 = vector.shape_cast %7 : vector<1x1x8x4xf32> to vector<1x8x4xf32>
    %9 = tpu.concatenate %6, %8 in 0 : vector<8x8x4xf32>, vector<1x8x4xf32> -> vector<9x8x4xf32>
    %c0_15 = arith.constant 0 : index
    %c0_16 = arith.constant 0 : index
    %c0_17 = arith.constant 0 : index
    %c0_18 = arith.constant 0 : index
    %10 = vector.load %arg6[%c0_15, %c0_16, %c0_17, %c0_18] : memref<1x8x9x4xf32, #tpu.memory_space<vmem>>, vector<1x8x9x4xf32>
    %11 = vector.shape_cast %10 : vector<1x8x9x4xf32> to vector<8x9x4xf32>
    %c0_19 = arith.constant 0 : index
    %c0_20 = arith.constant 0 : index
    %c0_21 = arith.constant 0 : index
    %c0_22 = arith.constant 0 : index
    %12 = vector.load %arg7[%c0_19, %c0_20, %c0_21, %c0_22] : memref<1x8x8x4xf32, #tpu.memory_space<vmem>>, vector<1x8x8x4xf32>
    %13 = vector.shape_cast %12 : vector<1x8x8x4xf32> to vector<8x8x4xf32>
    %14 = vector.extract_strided_slice %4 {offsets = [0, 0, 0], sizes = [8, 8, 4], strides = [1, 1, 1]} : vector<9x9x4xf32> to vector<8x8x4xf32>
    %15 = vector.extract_strided_slice %9 {offsets = [0, 0, 0], sizes = [8, 8, 4], strides = [1, 1, 1]} : vector<9x8x4xf32> to vector<8x8x4xf32>
    %16 = vector.extract_strided_slice %4 {offsets = [0, 1, 0], sizes = [8, 8, 4], strides = [1, 1, 1]} : vector<9x9x4xf32> to vector<8x8x4xf32>
    %17 = vector.extract_strided_slice %11 {offsets = [0, 0, 0], sizes = [8, 8, 4], strides = [1, 1, 1]} : vector<8x9x4xf32> to vector<8x8x4xf32>
    %18 = vector.extract_strided_slice %11 {offsets = [0, 1, 0], sizes = [8, 8, 4], strides = [1, 1, 1]} : vector<8x9x4xf32> to vector<8x8x4xf32>
    %19 = vector.extract_strided_slice %4 {offsets = [1, 0, 0], sizes = [8, 8, 4], strides = [1, 1, 1]} : vector<9x9x4xf32> to vector<8x8x4xf32>
    %20 = vector.extract_strided_slice %9 {offsets = [1, 0, 0], sizes = [8, 8, 4], strides = [1, 1, 1]} : vector<9x8x4xf32> to vector<8x8x4xf32>
    %21 = vector.extract_strided_slice %4 {offsets = [1, 1, 0], sizes = [8, 8, 4], strides = [1, 1, 1]} : vector<9x9x4xf32> to vector<8x8x4xf32>
    %22 = vector.shape_cast %14 : vector<8x8x4xf32> to vector<64x4xf32>
    %23 = vector.shape_cast %15 : vector<8x8x4xf32> to vector<64x4xf32>
    %24 = vector.shape_cast %16 : vector<8x8x4xf32> to vector<64x4xf32>
    %25 = vector.shape_cast %17 : vector<8x8x4xf32> to vector<64x4xf32>
    %26 = vector.shape_cast %13 : vector<8x8x4xf32> to vector<64x4xf32>
    %27 = vector.shape_cast %18 : vector<8x8x4xf32> to vector<64x4xf32>
    %28 = vector.shape_cast %19 : vector<8x8x4xf32> to vector<64x4xf32>
    %29 = vector.shape_cast %20 : vector<8x8x4xf32> to vector<64x4xf32>
    %30 = vector.shape_cast %21 : vector<8x8x4xf32> to vector<64x4xf32>
    %31 = tpu.concatenate %22, %23, %24, %25, %26, %27, %28, %29, %30 in 1 : vector<64x4xf32>, vector<64x4xf32>, vector<64x4xf32>, vector<64x4xf32>, vector<64x4xf32>, vector<64x4xf32>, vector<64x4xf32>, vector<64x4xf32>, vector<64x4xf32> -> vector<64x36xf32>
    %c0_23 = arith.constant 0 : index
    %c0_24 = arith.constant 0 : index
    %32 = vector.load %arg8[%c0_23, %c0_24] : memref<36x8xf32, #tpu.memory_space<vmem>>, vector<36x8xf32>
    %cst = arith.constant dense<0.000000e+00> : vector<64x8xf32>
    %33 = tpu.matmul %31, %32, %cst {dimension_numbers = #tpu.dot_dimension_numbers<[1], [0], [0], [1], [0, 0, 1, 1], [], []>} : vector<64x36xf32>, vector<36x8xf32>, vector<64x8xf32> -> vector<64x8xf32>
    %c0_25 = arith.constant 0 : index
    %c0_26 = arith.constant 0 : index
    %34 = vector.load %arg9[%c0_25, %c0_26] : memref<1x8xf32, #tpu.memory_space<vmem>>, vector<1x8xf32>
    %35 = vector.broadcast %34 : vector<1x8xf32> to vector<64x8xf32>
    %36 = arith.addf %33, %35 : vector<64x8xf32>
    %cst_27 = arith.constant 0.000000e+00 : f32
    %37 = vector.broadcast %cst_27 : f32 to vector<64x8xf32>
    %38 = arith.maximumf %36, %37 : vector<64x8xf32>
    %c0_28 = arith.constant 0 : index
    %c0_29 = arith.constant 0 : index
    %c0_30 = arith.constant 0 : index
    %c0_31 = arith.constant 0 : index
    %39 = vector.load %arg10[%c0_28, %c0_29, %c0_30, %c0_31] : memref<1x1x64x8xf32, #tpu.memory_space<vmem>>, vector<1x1x64x8xf32>
    %40 = vector.shape_cast %39 : vector<1x1x64x8xf32> to vector<64x8xf32>
    %41 = vector.shape_cast %38 : vector<64x8xf32> to vector<1x1x64x8xf32>
    tpu.vector_store %arg10[%c0_28, %c0_29, %c0_30, %c0_31], %41 {strides = array<i32>} : memref<1x1x64x8xf32, #tpu.memory_space<vmem>>, vector<1x1x64x8xf32>,
    %c0_i32 = arith.constant 0 : i32
    %42 = arith.cmpi eq, %arg1, %c0_i32 : i32
    %43 = tpu.iota {dimensions = array<i32: 0>} : vector<9x9x4xi32>
    %44 = tpu.iota {dimensions = array<i32: 1>} : vector<9x9x4xi32>
    %c0_i32_32 = arith.constant 0 : i32
    %45 = vector.broadcast %c0_i32_32 : i32 to vector<9x9x4xi32>
    %46 = arith.cmpi eq, %43, %45 : vector<9x9x4xi32>
    %47 = vector.broadcast %42 : i1 to vector<9x9x4xi1>
    %48 = arith.andi %46, %47 : vector<9x9x4xi1>
    %c0_i32_33 = arith.constant 0 : i32
    %49 = vector.broadcast %c0_i32_33 : i32 to vector<9x9x4xi32>
    %50 = arith.cmpi eq, %44, %49 : vector<9x9x4xi32>
    %51 = arith.ori %48, %50 : vector<9x9x4xi1>
    %cst_34 = arith.constant 0xFF800000 : f32
    %52 = vector.broadcast %cst_34 : f32 to vector<9x9x4xf32>
    %53 = arith.select %51, %52, %4 : vector<9x9x4xi1>, vector<9x9x4xf32>
    %54 = tpu.iota {dimensions = array<i32: 0>} : vector<9x8x4xi32>
    %c0_i32_35 = arith.constant 0 : i32
    %55 = vector.broadcast %c0_i32_35 : i32 to vector<9x8x4xi32>
    %56 = arith.cmpi eq, %54, %55 : vector<9x8x4xi32>
    %57 = vector.broadcast %42 : i1 to vector<9x8x4xi1>
    %58 = arith.andi %56, %57 : vector<9x8x4xi1>
    %cst_36 = arith.constant 0xFF800000 : f32
    %59 = vector.broadcast %cst_36 : f32 to vector<9x8x4xf32>
    %60 = arith.select %58, %59, %9 : vector<9x8x4xi1>, vector<9x8x4xf32>
    %61 = tpu.iota {dimensions = array<i32: 1>} : vector<8x9x4xi32>
    %c0_i32_37 = arith.constant 0 : i32
    %62 = vector.broadcast %c0_i32_37 : i32 to vector<8x9x4xi32>
    %63 = arith.cmpi eq, %61, %62 : vector<8x9x4xi32>
    %cst_38 = arith.constant 0xFF800000 : f32
    %64 = vector.broadcast %cst_38 : f32 to vector<8x9x4xf32>
    %65 = arith.select %63, %64, %11 : vector<8x9x4xi1>, vector<8x9x4xf32>
    %66 = vector.extract_strided_slice %53 {offsets = [0, 0, 0], sizes = [8, 8, 4], strides = [1, 1, 1]} : vector<9x9x4xf32> to vector<8x8x4xf32>
    %67 = vector.extract_strided_slice %60 {offsets = [0, 0, 0], sizes = [8, 8, 4], strides = [1, 1, 1]} : vector<9x8x4xf32> to vector<8x8x4xf32>
    %68 = vector.extract_strided_slice %53 {offsets = [0, 1, 0], sizes = [8, 8, 4], strides = [1, 1, 1]} : vector<9x9x4xf32> to vector<8x8x4xf32>
    %69 = vector.extract_strided_slice %65 {offsets = [0, 0, 0], sizes = [8, 8, 4], strides = [1, 1, 1]} : vector<8x9x4xf32> to vector<8x8x4xf32>
    %70 = vector.extract_strided_slice %65 {offsets = [0, 1, 0], sizes = [8, 8, 4], strides = [1, 1, 1]} : vector<8x9x4xf32> to vector<8x8x4xf32>
    %71 = vector.extract_strided_slice %53 {offsets = [1, 0, 0], sizes = [8, 8, 4], strides = [1, 1, 1]} : vector<9x9x4xf32> to vector<8x8x4xf32>
    %72 = vector.extract_strided_slice %60 {offsets = [1, 0, 0], sizes = [8, 8, 4], strides = [1, 1, 1]} : vector<9x8x4xf32> to vector<8x8x4xf32>
    %73 = vector.extract_strided_slice %53 {offsets = [1, 1, 0], sizes = [8, 8, 4], strides = [1, 1, 1]} : vector<9x9x4xf32> to vector<8x8x4xf32>
    %74 = arith.maximumf %66, %67 : vector<8x8x4xf32>
    %75 = arith.maximumf %74, %68 : vector<8x8x4xf32>
    %76 = arith.maximumf %75, %69 : vector<8x8x4xf32>
    %77 = arith.maximumf %76, %13 : vector<8x8x4xf32>
    %78 = arith.maximumf %77, %70 : vector<8x8x4xf32>
    %79 = arith.maximumf %78, %71 : vector<8x8x4xf32>
    %80 = arith.maximumf %79, %72 : vector<8x8x4xf32>
    %81 = arith.maximumf %80, %73 : vector<8x8x4xf32>
    %82 = vector.shape_cast %81 : vector<8x8x4xf32> to vector<64x4xf32>
    %c0_39 = arith.constant 0 : index
    %c0_40 = arith.constant 0 : index
    %c0_41 = arith.constant 0 : index
    %c0_42 = arith.constant 0 : index
    %83 = vector.load %arg11[%c0_39, %c0_40, %c0_41, %c0_42] : memref<1x1x64x4xf32, #tpu.memory_space<vmem>>, vector<1x1x64x4xf32>
    %84 = vector.shape_cast %83 : vector<1x1x64x4xf32> to vector<64x4xf32>
    %85 = vector.shape_cast %82 : vector<64x4xf32> to vector<1x1x64x4xf32>
    tpu.vector_store %arg11[%c0_39, %c0_40, %c0_41, %c0_42], %85 {strides = array<i32>} : memref<1x1x64x4xf32, #tpu.memory_space<vmem>>, vector<1x1x64x4xf32>,
    return
  }
  func.func @transform_0(%arg0: i32, %arg1: i32) -> (i32, i32, i32, i32) {
    %c0_i32 = arith.constant 0 : i32
    %c0_i32_0 = arith.constant 0 : i32
    %c0_i32_1 = arith.constant 0 : i32
    return %arg0, %arg1, %c0_i32, %c0_i32_0 : i32, i32, i32, i32
  }
  func.func @transform_1(%arg0: i32, %arg1: i32) -> (i32, i32, i32, i32) {
    %c8_i32 = arith.constant 8 : i32
    %0 = arith.muli %arg1, %c8_i32 : i32
    %c8_i32_0 = arith.constant 8 : i32
    %1 = arith.addi %0, %c8_i32_0 : i32
    %c0_i32 = arith.constant 0 : i32
    %c0_i32_1 = arith.constant 0 : i32
    %c0_i32_2 = arith.constant 0 : i32
    return %arg0, %1, %c0_i32, %c0_i32_1 : i32, i32, i32, i32
  }
  func.func @transform_2(%arg0: i32, %arg1: i32) -> (i32, i32, i32, i32) {
    %c0_i32 = arith.constant 0 : i32
    %c0_i32_0 = arith.constant 0 : i32
    %c0_i32_1 = arith.constant 0 : i32
    return %arg0, %arg1, %c0_i32, %c0_i32_0 : i32, i32, i32, i32
  }
  func.func @transform_3(%arg0: i32, %arg1: i32) -> (i32, i32, i32, i32) {
    %c8_i32 = arith.constant 8 : i32
    %0 = arith.muli %arg1, %c8_i32 : i32
    %c8_i32_0 = arith.constant 8 : i32
    %1 = arith.addi %0, %c8_i32_0 : i32
    %c0_i32 = arith.constant 0 : i32
    %c0_i32_1 = arith.constant 0 : i32
    %c0_i32_2 = arith.constant 0 : i32
    return %arg0, %1, %c0_i32, %c0_i32_1 : i32, i32, i32, i32
  }
  func.func @transform_4(%arg0: i32, %arg1: i32) -> (i32, i32, i32, i32) {
    %c0_i32 = arith.constant 0 : i32
    %c0_i32_0 = arith.constant 0 : i32
    %c0_i32_1 = arith.constant 0 : i32
    return %arg0, %arg1, %c0_i32, %c0_i32_0 : i32, i32, i32, i32
  }
  func.func @transform_5(%arg0: i32, %arg1: i32) -> (i32, i32, i32, i32) {
    %c0_i32 = arith.constant 0 : i32
    %c0_i32_0 = arith.constant 0 : i32
    %c0_i32_1 = arith.constant 0 : i32
    return %arg0, %arg1, %c0_i32, %c0_i32_0 : i32, i32, i32, i32
  }
  func.func @transform_6(%arg0: i32, %arg1: i32) -> (i32, i32) {
    %c0_i32 = arith.constant 0 : i32
    %c0_i32_0 = arith.constant 0 : i32
    %c0_i32_1 = arith.constant 0 : i32
    return %c0_i32, %c0_i32_0 : i32, i32
  }
  func.func @transform_7(%arg0: i32, %arg1: i32) -> (i32, i32) {
    %c0_i32 = arith.constant 0 : i32
    %c0_i32_0 = arith.constant 0 : i32
    %c0_i32_1 = arith.constant 0 : i32
    return %c0_i32, %c0_i32_0 : i32, i32
  }
  func.func @transform_8(%arg0: i32, %arg1: i32) -> (i32, i32, i32, i32) {
    %c0_i32 = arith.constant 0 : i32
    %c0_i32_0 = arith.constant 0 : i32
    %c0_i32_1 = arith.constant 0 : i32
    return %arg0, %arg1, %c0_i32, %c0_i32_0 : i32, i32, i32, i32
  }
  func.func @transform_9(%arg0: i32, %arg1: i32) -> (i32, i32, i32, i32) {
    %c0_i32 = arith.constant 0 : i32
    %c0_i32_0 = arith.constant 0 : i32
    %c0_i32_1 = arith.constant 0 : i32
    return %arg0, %arg1, %c0_i32, %c0_i32_0 : i32, i32, i32, i32
  }
}

</mosaic_0001>

<bundles_post_ra>
// kernel: downsample_module.1
= control target key start
LH: loop header
LB: loop body
LE: loop exit
PB: predicated region body
PF: predicated region fallthrough
CT: control target
= control target key end

     0   :  { %s1905_s30 = smov 0   ;;  %s1907_s10 = smov 0   ;;  %s2637_s0 = inlined_call_operand.vmem [shape: f32[2,9,9,4], index: 0, kind: input, shape index: {}, may-alias: {0,1}]   ;;  %s2638_s1 = inlined_call_operand.vmem [shape: f32[2,9,9,4], index: 1, kind: input, shape index: {}, may-alias: {0,1}]   ;;  %s2639_s2 = inlined_call_operand.vmem [shape: f32[2,9,8,4], index: 2, kind: input, shape index: {}, may-alias: {2,3}]   ;;  %s2640_s3 = inlined_call_operand.vmem [shape: f32[2,9,8,4], index: 3, kind: input, shape index: {}, may-alias: {2,3}]   ;;  %s2641_s4 = inlined_call_operand.vmem [shape: f32[2,8,9,4], index: 4, kind: input, shape index: {}]   ;;  %s2642_s5 = inlined_call_operand.vmem [shape: f32[2,8,8,4], index: 5, kind: input, shape index: {}]   ;;  %s2643_s6 = inlined_call_operand.vmem [shape: f32[36,8], index: 6, kind: input, shape index: {}]   ;;  %s2644_s7 = inlined_call_operand.vmem [shape: f32[1,8], index: 7, kind: input, shape index: {}]   ;;  %s2645_s8 = inlined_call_operand.vmem [shape: f32[2,1,64,8], index: 8, kind: output, shape index: {0}]   ;;  %s2646_s9 = inlined_call_operand.vmem [shape: f32[2,1,64,4], index: 9, kind: output, shape index: {1}]  }
   0x1   :  { %s1909_s11 = smov 0  }
   0x2 LB: > { %s32_s12 = sadd.s32 1, %s1840_s10  ;;  %p1701_p0 = scmp.ge.s32.totalorder %s1844_s11, 1  ;;  %s1844_s11 = sphi %s1909_s11, %s20_s11   ;;  %s1840_s10 = sphi %s1907_s10, %s2692_s10   ;;  %s1836_s30 = sphi %s1905_s30, %s2691_s30  }
   0x3   : > { %p34_p1 = scmp.ge.s32.totalorder %s32_s12, 2  ;;  %p431_p2 = scmp.lt.s32.totalorder %s1844_s11, 3 }
   0x5   : > { %s2694_s12 = smov (%p34_p1, %s32_s12), 0  ;;  %p432_p3 = pnand %p1701_p0, %p431_p2 }
   0x7   : > { %435 = sbr.rel (%p432_p3) target bundleno = 479 (0x1df), region = 52 }
   0xe   : > { %p549_p4 = scmp.lt.s32.totalorder %s1836_s30, 1  ;;  %v1227_v0 = vlaneseq  ;;  %v1846_v7 = vmov -inf   ;;  %s1847_s22 = smov 4   ;;  %vm713_vm1 = vcmask 1046528   ;;  %vm992_vm2 = vcmask 31744  }
   0xf   : > { %v1306_v8 = vrot.slane %v1846_v7, 1  ;;  %s1849_s15 = smov 12   ;;  %s1850_s23 = smov 16   ;;  %vm1101_vm3 = vcmask 1043456   ;;  %vm1001_vm4 = vcmask 64512   ;;  %vm1010_vm5 = vcmask 97280  }
  0x10   : > { %s2696_s30 = smov (!%p549_p4, %s1836_s30), 1  ;;  %v1925_v1 = vshrl.u32 %v1227_v0, 7  ;;  %vm1019_vm6 = vcmask 130048   ;;  %vm1028_vm7 = vcmask 162816   ;;  %vm1037_vm8 = vcmask 195584  }
  0x11   : > { %s1785_s13 = smul.u32 72, %s2696_s30  ;;  %s1730_s14 = sshll.u32 %s2696_s30, 7  ;;  %vm1046_vm9 = vcmask 228352   ;;  %vm1055_vm10 = vcmask 261120   ;;  %vm1076_vm11 = vcmask 293888  }
  0x12   : > { %s1932_s17 = scalar_lea.vmem %s2641_s4, %s1730_s14  ;;  %vm1233_vm0 = vcmp.eq.s32.totalorder %v1925_v1, 0  ;;  %s1783_s21 = smul.u32 144, %s2696_s30 }
  0x13   : > { %s1939_s20 = scalar_lea.vmem %s2639_s2, %s1785_s13  ;;  %v1944_v2 = vld [vmem:[%s1932_s17 + $0x40] sm:$0xff]  ;;  %s2009_s26 = sshll.u32 %s2696_s30, 6  ;;  %v2021_v29 = vld [vmem:[%s1932_s17 + $0x50] sm:$0xff]  ;;  %v2041_v41 = vld [vmem:[%s1932_s17 + $0x48] sm:$0x1] }
  0x14   : > { %v1947_v3 = vld [vmem:[%s1939_s20 + $0x8] sm:$0xff]  ;;  %v664_v4 = vld [vmem:[%s1939_s20] sm:$0xff]  ;;  %v1953_v5 = vsel %vm1233_vm0, -inf, %v1944_v2  ;;  %s1965_s25 = scalar_lea.vmem %s2637_s0, %s1783_s21  ;;  %s2027_s29 = scalar_lea.vmem %s2642_s5, %s2009_s26  ;;  %v1276_v38 = vsel %vm1233_vm0, -inf, %v2021_v29  ;;  %v2067_v51 = vld [vmem:[%s1932_s17 + $0x10] sm:$0xff]  ;;  %v767_v55 = vrot.slane %v2041_v41, 1 }
  0x15   : > { %v1956_v6 = vld [vmem:[%s1932_s17] sm:$0xff]  ;;  %793 = vrot.lane.b32.xlu1 %v1947_v3, %s1847_s22  ;;  %791 = vrot.lane.b32.xlu0 %v664_v4, %s1847_s22  ;;  %v1972_v10 = vld [vmem:[%s1939_s20 + $0x28] sm:$0xff]  ;;  %v1390_v13 = vrot.slane %v1953_v5, 1  ;;  %s1848_s14 = smov 8   ;;  %v1268_v54 = vsel %vm1233_vm0, -inf, %v2067_v51  ;;  %v1393_v60 = vrot.slane %v1276_v38, 1  ;;  %s2124_s19 = scalar_lea.vmem %s2646_s9, %s2009_s26 }
  0x16   : > { %v1266_v9 = vsel %vm1233_vm0, -inf, %v1956_v6  ;;  %v1975_v11 = vld [vmem:[%s1939_s20 + $0x20] sm:$0xff]  ;;  %v1982_v14 = vld [vmem:[%s1965_s25 + $0x10] sm:$0xff]  ;;  %v655_v17 = vld [vmem:[%s1965_s25 + $0x48] sm:$0x1]  ;;  %s1851_s30 = smov 20  }
  0x17   : > { %v1978_v12 = vld [vmem:[%s1965_s25 + $0x40] sm:$0xff]  ;;  %v1985_v15 = vld [vmem:[%s1965_s25 + $0x50] sm:$0xff]  ;;  %v1997_v19 = vsel %vm1233_vm0, -inf, %v1982_v14  ;;  %v647_v22 = vld [vmem:[%s1965_s25 + $0x8] sm:$0x1]  ;;  %v1346_v23 = vmax.f32 %v1306_v8, %v1266_v9  ;;  %v727_v26 = vrot.slane %v655_v17, 1  ;;  %v1392_v62 = vsel %vm713_vm1, %v1390_v13, %v767_v55 }
  0x18   : > { %2660 = vst [vmem:[#allocation2_spill] sm:$0xff] %v1978_v12  ;;  %v1990_v16 = vsel %vm1233_vm0, -inf, %v1978_v12  ;;  %v726_v18 = vrot.slane %v1978_v12, 1  ;;  %v2002_v20 = vsel %vm1233_vm0, -inf, %v1985_v15  ;;  %v2005_v21 = vld [vmem:[%s1965_s25] sm:$0xff]  ;;  %v715_v30 = vrot.slane %v647_v22, 1 }
  0x19   : > { %2661 = vst [vmem:[#allocation3_spill] sm:$0xff] %v2005_v21  ;;  %801 = vrot.lane.b32.xlu1 %v1972_v10, %s1847_s22  ;;  %799 = vrot.lane.b32.xlu0 %v1975_v11, %s1847_s22  ;;  %v1286_v24 = vmax.f32 %v1990_v16, %v1975_v11  ;;  %v1318_v25 = vrot.slane %v1990_v16, 1  ;;  %v714_v27 = vrot.slane %v2005_v21, 1  ;;  %v657_v28 = vld [vmem:[%s1965_s25 + $0x58] sm:$0x1]  ;;  %v729_v31 = vrot.slane %v1985_v15, 1 }
  0x1a   : > { %v730_v32 = vrot.slane %v657_v28, 1  ;;  %v649_v33 = vld [vmem:[%s1965_s25 + $0x18] sm:$0x1]  ;;  %v717_v34 = vrot.slane %v1982_v14, 1  ;;  %v2033_v35 = vsel %vm713_vm1, %v726_v18, %v727_v26  ;;  %v1378_v37 = vrot.slane %v1266_v9, 1  ;;  %v2047_v43 = vld [vmem:[%s2027_s29] sm:$0xff] }
  0x1b   : > { %2662 = vst [vmem:[#allocation4_spill] sm:$0xff] %v2033_v35  ;;  %v718_v36 = vrot.slane %v649_v33, 1  ;;  %v1309_v39 = vrot.slane %v1997_v19, 1  ;;  %v716_v40 = vsel %vm713_vm1, %v714_v27, %v715_v30  ;;  %v2044_v42 = vld [vmem:[%s1932_s17 + $0x8] sm:$0x1]  ;;  %v1321_v44 = vrot.slane %v2002_v20, 1 }
  0x1c   : > { %v2054_v45 = vsel %vm713_vm1, %v1318_v25, %v727_v26  ;;  %v755_v46 = vrot.slane %v2044_v42, 1  ;;  %v1354_v47 = vmax.f32 %v1346_v23, %v2047_v43  ;;  %v1287_v48 = vmax.f32 %v2002_v20, %v1972_v10  ;;  %v2081_v59 = vld [vmem:[%s1932_s17 + $0x58] sm:$0x1]  ;;  %v2088_v61 = vld [vmem:[%s2027_s29 + $0x20] sm:$0xff]  ;;  %v2139_v33 = vld [vmem:[%s1939_s20 + $0x30] sm:$0xff] }
  0x1d   : > { %823 = vrot.lane.b32.xlu1 %v2033_v35, %s1848_s14  ;;  %815 = vrot.lane.b32.xlu0 %v716_v40, %s1848_s14  ;;  %v2061_v49 = vsel %vm713_vm1, %v729_v31, %v730_v32  ;;  %v2064_v50 = vsel %vm713_vm1, %v717_v34, %v718_v36  ;;  %v1342_v52 = vmax.f32 %v1286_v24, %v2054_v45  ;;  %v2095_v0 = vld [vmem:[%s1932_s17 + $0x18] sm:$0x1]  ;;  %v2101_v9 = vld [vmem:[%s1965_s25 + $0x60] sm:$0xff]  ;;  %v766_v18 = vrot.slane %v1944_v2, 1 }
  0x1e   : > { %2663 = vst [vmem:[#allocation5_spill] sm:$0xff] %v2061_v49  ;;  %2664 = vst [vmem:[#allocation6_spill] sm:$0xff] %v2064_v50  ;;  %v1283_v53 = vmax.f32 %v1997_v19, %v1947_v3  ;;  %v1380_v56 = vsel %vm713_vm1, %v1378_v37, %v755_v46  ;;  %v1323_v63 = vsel %vm713_vm1, %v1321_v44, %v730_v32  ;;  %v2107_v13 = vsel %vm1233_vm0, -inf, %v2101_v9  ;;  %v2132_v31 = vld [vmem:[%s2027_s29 + $0x28] sm:$0xff]  ;;  %v2152_v44 = vld [vmem:[%s1965_s25 + $0x70] sm:$0xff] }
  0x1f   : > { %v1350_v57 = vmax.f32 %v1342_v52, %v1953_v5  ;;  %v1410_v58 = vmax.f32 %v1354_v47, %v1380_v56  ;;  %v1311_v4 = vsel %vm713_vm1, %v1309_v39, %v718_v36  ;;  %v1381_v5 = vrot.slane %v1268_v54, 1  ;;  %2665 = vst [vmem:[#allocation7_spill] sm:$0xff] %v2139_v33  ;;  %v2143_v36 = vld [vmem:[%s2027_s29 + $0x8] sm:$0xff]  ;;  %v680_v12 = vld [vmem:[%s1932_s17 + $0x38] sm:$0x1] }
  0x20   : > { %v1343_v17 = vmax.f32 %v1287_v48, %v1323_v63  ;;  %v2648_v22 = vrot.slane %v2081_v59, 1  ;;  %v1339_v23 = vmax.f32 %v1283_v53, %v1311_v4  ;;  %v2647_v27 = vrot.slane %v2095_v0, 1  ;;  %v2159_v48 = vld [vmem:[%s1939_s20 + $0x10] sm:$0xff]  ;;  %v2164_v53 = vld [vmem:[%s1939_s20 + $0x38] sm:$0xff] }
  0x21   : > { %825 = vrot.lane.b32.xlu1 %v2061_v49, %s1848_s14  ;;  %817 = vrot.lane.b32.xlu0 %v2064_v50, %s1848_s14  ;;  %v1358_v7 = vmax.f32 %v1350_v57, %v2088_v61  ;;  %v1418_v8 = vmax.f32 %v1410_v58, %v1997_v19  ;;  %v2112_v19 = vld [vmem:[%s1965_s25 + $0x20] sm:$0xff]  ;;  %v754_v28 = vrot.slane %v1956_v6, 1  ;;  %v1288_v39 = vmax.f32 %v2107_v13, %v2139_v33 }
  0x22   : > { %v1351_v26 = vmax.f32 %v1343_v17, %v1276_v38  ;;  %v2129_v30 = vsel %vm1233_vm0, -inf, %v2112_v19  ;;  %v1383_v37 = vsel %vm713_vm1, %v1381_v5, %v2647_v27  ;;  %2666 = vst [vmem:[#allocation8_spill] sm:$0xff] %v2159_v48  ;;  %v1324_v57 = vrot.slane %v2107_v13, 1  ;;  %v2188_v5 = vld [vmem:[%s1965_s25 + $0x68] sm:$0x1] }
  0x23   : > { %v1414_v24 = vmax.f32 %v1358_v7, %v1392_v62  ;;  %v1426_v25 = vmax.f32 %v1418_v8, %v1947_v3  ;;  %v1284_v58 = vmax.f32 %v2129_v30, %v2159_v48  ;;  %v2194_v17 = vsel %vm713_vm1, %v766_v18, %v767_v55  ;;  %v2217_v18 = vld [vmem:[%s1932_s17 + $0x60] sm:$0xff] }
  0x24   : > { %v1359_v34 = vmax.f32 %v1351_v26, %v2132_v31  ;;  %v2208_v26 = vld [vmem:[%s1965_s25 + $0x38] sm:$0x1] }
  0x25   : > { %847 = vrot.lane.b32.xlu1 %v1944_v2, %s1849_s15  ;;  %839 = vrot.lane.b32.xlu0 %v1956_v6, %s1849_s15  ;;  %v1395_v2 = vsel %vm713_vm1, %v1393_v60, %v2648_v22  ;;  %v1347_v6 = vmax.f32 %v1339_v23, %v1268_v54  ;;  %v1422_v32 = vmax.f32 %v1414_v24, %v2002_v20  ;;  %v2155_v20 = vld [vmem:[%s1965_s25 + $0x30] sm:$0xff]  ;;  %v2169_v54 = vsel %vm1233_vm0, -inf, %v2152_v44  ;;  %v2202_v24 = vld [vmem:[%s1965_s25 + $0x28] sm:$0x1] }
  0x26   : > { %v1440_v38 = vmax.f32 %v1426_v25, %v1311_v4  ;;  %v1415_v52 = vmax.f32 %v1359_v34, %v1395_v2  ;;  %v2174_v56 = vsel %vm1233_vm0, -inf, %v2155_v20  ;;  %v1312_v60 = vrot.slane %v2129_v30, 1  ;;  %v2185_v4 = vld [vmem:[%s1939_s20 + $0x18] sm:$0xff]  ;;  %v2228_v2 = vld [vmem:[%s1932_s17 + $0x20] sm:$0xff]  ;;  %s2235_s20 = sadd.s32 128, %s1783_s21 }
  0x27   : > { %v1355_v40 = vmax.f32 %v1347_v6, %v2143_v36  ;;  %v1430_v47 = vmax.f32 %v1422_v32, %v1972_v10  ;;  %v2199_v23 = vsel %vm713_vm1, %v754_v28, %v755_v46  ;;  %v2205_v25 = vld [vmem:[%s1965_s25 + $0x78] sm:$0x1]  ;;  %v1289_v41 = vmax.f32 %v2169_v54, %v2164_v53  ;;  %v2231_v6 = vld [vmem:[%s1932_s17 + $0x70] sm:$0xff]  ;;  %s574_s24 = scalar_lea.vmem %s2638_s1, %s2235_s20  ;;  %s1729_s25 = sadd.s32 64, %s1785_s13 }
  0x28   : > { %1448 = vst.msk [vmem:[%s2124_s19] sm:$0xff] %vm992_vm2, %v1440_v38  ;;  %v1423_v7 = vmax.f32 %v1415_v52, %v2107_v13  ;;  %v1327_v55 = vrot.slane %v2169_v54, 1  ;;  %v1285_v42 = vmax.f32 %v2174_v56, %v2185_v4  ;;  %v1315_v13 = vrot.slane %v2174_v56, 1  ;;  %2667 = vst [vmem:[#allocation9_spill] sm:$0xff] %v2231_v6  ;;  %s604_s28 = scalar_lea.vmem %s2640_s3, %s1729_s25  ;;  %s1854_s13 = smov 32  }
  0x29   : > { %849 = vrot.lane.b32.xlu1 %v2021_v29, %s1849_s15  ;;  %841 = vrot.lane.b32.xlu0 %v2067_v51, %s1849_s15  ;;  %v1411_v62 = vmax.f32 %v1355_v40, %v1383_v37  ;;  %v1444_v8 = vmax.f32 %v1430_v47, %v1323_v63  ;;  %v2656_v28 = vrot.slane %v2188_v5, 1  ;;  %v1270_v38 = vsel %vm1233_vm0, -inf, %v2228_v2  ;;  %v2248_v40 = vld [vmem:[%s1932_s17 + $0x68] sm:$0x1]  ;;  %v688_v37 = vld [vmem:[%s1932_s17 + $0x78] sm:$0x1] }
  0x2a   : > { %v1431_v46 = vmax.f32 %v1423_v7, %v2139_v33  ;;  %v1384_v52 = vrot.slane %v1270_v38, 1  ;;  %v2258_v7 = vld [vmem:[%s1932_s17 + $0x28] sm:$0x1]  ;;  %v776_v49 = vrot.slane %v688_v37, 1 }
  0x2b   : > { %v1419_v63 = vmax.f32 %v1411_v62, %v2129_v30  ;;  %1452 = vst.msk [vmem:[%s2124_s19 + $0x20] sm:$0xff] %vm992_vm2, %v1444_v8  ;;  %v1278_v30 = vsel %vm1233_vm0, -inf, %v2217_v18  ;;  %v2255_v62 = vld [vmem:[%s1932_s17 + $0x30] sm:$0xff]  ;;  %v775_v8 = vrot.slane %v2231_v6, 1 }
  0x2c   : > { %2668 = vst [vmem:[#allocation10_spill] sm:$0xff] %v2255_v62  ;;  %v763_v27 = vrot.slane %v2255_v62, 1  ;;  %v1272_v22 = vsel %vm1233_vm0, -inf, %v2255_v62  ;;  %v2669_v62 = vrot.slane %v2202_v24, 1 }
  0x2d   : > { %879 = vrot.lane.b32.xlu1 %v2088_v61, %s1850_s23  ;;  %871 = vrot.lane.b32.xlu0 %v2047_v43, %s1850_s23  ;;  %v1427_v47 = vmax.f32 %v1419_v63, %v2159_v48  ;;  %v1396_v61 = vrot.slane %v1278_v30, 1  ;;  %v1280_v43 = vsel %vm1233_vm0, -inf, %v2231_v6  ;;  %v1326_v63 = vsel %vm713_vm1, %v1324_v57, %v2656_v28 }
  0x2e   : > { %v1399_v34 = vrot.slane %v1280_v43, 1  ;;  %v1344_v35 = vmax.f32 %v1288_v39, %v1326_v63  ;;  %v1445_v21 = vmax.f32 %v1431_v46, %v1326_v63  ;;  %v1387_v50 = vrot.slane %v1272_v22, 1 }
  0x2f   : > { %v1314_v57 = vsel %vm713_vm1, %v1312_v60, %v2669_v62  ;;  %v2670_v28 = vrot.slane %v2205_v25, 1  ;;  %v2671_v60 = vrot.slane %v2248_v40, 1  ;;  %v764_v6 = vrot.slane %v680_v12, 1  ;;  %v663_v12 = vld [vmem:[%s574_s24 + $0x8] sm:$0x1] }
  0x30   : > { %v1352_v46 = vmax.f32 %v1344_v35, %v1278_v30  ;;  %1453 = vst.msk [vmem:[%s2124_s19 + $0x28] sm:$0xff] %vm992_vm2, %v1445_v21  ;;  %v1340_v63 = vmax.f32 %v1284_v58, %v1314_v57  ;;  %v1441_v32 = vmax.f32 %v1427_v47, %v1314_v57  ;;  %v2673_v58 = vrot.slane %v2258_v7, 1  ;;  %v2303_v47 = vld [vmem:[%s574_s24] sm:$0xff]  ;;  %v2317_v57 = vld [vmem:[%s2027_s29 + $0x38] sm:$0xff] }
  0x31   : > { %803 = vrot.lane.b32.xlu1 %v2139_v33, %s1847_s22  ;;  %795 = vrot.lane.b32.xlu0 %v2159_v48, %s1847_s22  ;;  %v1329_v39 = vsel %vm713_vm1, %v1327_v55, %v2670_v28  ;;  %v2289_v48 = vld [vmem:[%s2027_s29 + $0x30] sm:$0xff]  ;;  %v1398_v62 = vsel %vm713_vm1, %v1396_v61, %v2671_v60  ;;  %v2672_v55 = vrot.slane %v2208_v26, 1  ;;  %v1389_v61 = vsel %vm713_vm1, %v1387_v50, %v764_v6 }
  0x32   : > { %v1345_v33 = vmax.f32 %v1289_v41, %v1329_v39  ;;  %v1360_v35 = vmax.f32 %v1352_v46, %v2289_v48  ;;  %v1348_v21 = vmax.f32 %v1340_v63, %v1270_v38  ;;  %v1386_v30 = vsel %vm713_vm1, %v1384_v52, %v2673_v58  ;;  %1449 = vst.msk [vmem:[%s2124_s19 + $0x8] sm:$0xff] %vm992_vm2, %v1441_v32  ;;  %v2310_v41 = vld [vmem:[%s2027_s29 + $0x10] sm:$0xff]  ;;  %v2352_v58 = vld [vmem:[%s604_s28] sm:$0xff] }
  0x33   : > { %v1317_v28 = vsel %vm713_vm1, %v1315_v13, %v2672_v55  ;;  %v1401_v38 = vsel %vm713_vm1, %v1399_v34, %v776_v49  ;;  %v780_v32 = vrot.slane %v2303_v47, 1  ;;  %v2329_v34 = vsel %vm713_vm1, %v763_v27, %v764_v6 }
  0x34   : > { %v1341_v37 = vmax.f32 %v1285_v42, %v1317_v28  ;;  %v1353_v13 = vmax.f32 %v1345_v33, %v1280_v43  ;;  %v1416_v42 = vmax.f32 %v1360_v35, %v1398_v62  ;;  %v1356_v52 = vmax.f32 %v1348_v21, %v2310_v41  ;;  %v2326_v33 = vld [vmem:[%s2027_s29 + $0x18] sm:$0xff]  ;;  %s1853_s29 = smov 28  }
  0x35   : > { %881 = vrot.lane.b32.xlu1 %v2132_v31, %s1850_s23  ;;  %873 = vrot.lane.b32.xlu0 %v2143_v36, %s1850_s23  ;;  %v2320_v31 = vsel %vm713_vm1, %v775_v8, %v776_v49  ;;  %v781_v50 = vrot.slane %v663_v12, 1  ;;  %v1255_v43 = vsel %vm1233_vm0, -inf, %v2303_v47  ;;  %v732_v27 = vrot.slane %v2101_v9, 1 }
  0x36   : > { %v1349_v46 = vmax.f32 %v1341_v37, %v1272_v22  ;;  %v1361_v36 = vmax.f32 %v1353_v13, %v2317_v57  ;;  %v1424_v63 = vmax.f32 %v1416_v42, %v2169_v54  ;;  %v1412_v22 = vmax.f32 %v1356_v52, %v1386_v30 }
  0x37   : > { %v1436_v8 = vrot.slane %v1255_v43, 1  ;;  %v2345_v1 = vsel %vm713_vm1, %v780_v32, %v781_v50  ;;  %v720_v54 = vrot.slane %v2112_v19, 1  ;;  %v769_v37 = vrot.slane %v2021_v29, 1 }
  0x38   : > { %v1357_v49 = vmax.f32 %v1349_v46, %v2326_v33  ;;  %v1417_v6 = vmax.f32 %v1361_v36, %v1401_v38  ;;  %v1432_v60 = vmax.f32 %v1424_v63, %v2164_v53  ;;  %v757_v12 = vrot.slane %v2067_v51, 1 }
  0x39   : > { %903 = vrot.lane.b32.xlu1 %v2194_v17, %s1851_s30  ;;  %895 = vrot.lane.b32.xlu0 %v2199_v23, %s1851_s30  ;;  %v1420_v17 = vmax.f32 %v1412_v22, %v2174_v56  ;;  %v1438_v30 = vsel %vm713_vm1, %v1436_v8, %v781_v50  ;;  %v2675_v13 = vrot.slane %v2202_v24, 1  ;;  %v2677_v42 = vrot.slane %v2095_v0, 1  ;;  %v2680_v50 = vld [vmem:[#allocation9_spill] sm:$0xff]  ;;  %v2682_v8 = vld [vmem:[#allocation7_spill] sm:$0xff] }
  0x3a   : > { %v1413_v62 = vmax.f32 %v1357_v49, %v1389_v61  ;;  %v1425_v55 = vmax.f32 %v1417_v6, %v1255_v43  ;;  %v1446_v35 = vmax.f32 %v1432_v60, %v1329_v39  ;;  %v723_v52 = vrot.slane %v2155_v20, 1  ;;  %v2681_v43 = vld [vmem:[#allocation10_spill] sm:$0xff] }
  0x3b   : > { %v1428_v23 = vmax.f32 %v1420_v17, %v2185_v4  ;;  %v2370_v29 = vsel %vm713_vm1, %v720_v54, %v2675_v13  ;;  %v2679_v46 = vrot.slane %v2208_v26, 1  ;;  %v1065_v26 = vld [vmem:[%s2643_s6 + $0x8] sm:$0xff]  ;;  %v1068_v49 = vld [vmem:[%s2643_s6 + $0x20] sm:$0xf]  ;;  %v772_v6 = vrot.slane %v2217_v18, 1 }
  0x3c   : > { %v1421_v21 = vmax.f32 %v1413_v62, %v1990_v16  ;;  %v1433_v56 = vmax.f32 %v1425_v55, %v2352_v58  ;;  %v2674_v16 = vrot.slane %v2188_v5, 1  ;;  %1454 = vst.msk [vmem:[%s2124_s19 + $0x30] sm:$0xff] %vm992_vm2, %v1446_v35  ;;  %v2676_v5 = vrot.slane %v2081_v59, 1 }
  0x3d   : > { %805 = vrot.lane.b32.xlu1 %v2164_v53, %s1847_s22  ;;  %797 = vrot.lane.b32.xlu0 %v2185_v4, %s1847_s22  ;;  %v1442_v38 = vmax.f32 %v1428_v23, %v1317_v28  ;;  %v759_v28 = vsel %vm713_vm1, %v757_v12, %v2677_v42  ;;  %s1852_s22 = smov 24   ;;  %v2678_v59 = vrot.slane %v2205_v25, 1  ;;  %v2408_v36 = vsel %vm713_vm1, %v723_v52, %v2679_v46  ;;  %v1064_v25 = vld [vmem:[%s2643_s6] sm:$0xff]  ;;  %v2690_v23 = vld [vmem:[#allocation4_spill] sm:$0xff] }
  0x3e   : > { %v2365_v39 = vsel %vm713_vm1, %v732_v27, %v2674_v16  ;;  %v1429_v51 = vmax.f32 %v1421_v21, %v1975_v11  ;;  %v1447_v61 = vmax.f32 %v1433_v56, %v1438_v30  ;;  %v771_v24 = vsel %vm713_vm1, %v769_v37, %v2676_v5  ;;  %v2683_v27 = vld [vmem:[#allocation8_spill] sm:$0xff] }
  0x3f   : > { %1450 = vst.msk [vmem:[%s2124_s19 + $0x10] sm:$0xff] %vm992_vm2, %v1442_v38  ;;  %v1769_v63 = vpack.c.bf16 %v1065_v26, %v1064_v25  ;;  %v760_v54 = vrot.slane %v2228_v2, 1  ;;  %v2686_v60 = vrot.slane %v2248_v40, 1  ;;  %v2687_v62 = vrot.slane %v2258_v7, 1 }
  0x40   : > { %v1443_v32 = vmax.f32 %v1429_v51, %v2054_v45  ;;  %1455 = vst.msk [vmem:[%s2124_s19 + $0x38] sm:$0xff] %vm992_vm2, %v1447_v61  ;;  %v735_v45 = vrot.slane %v2152_v44, 1 }
  0x41   : > { %827 = vrot.lane.b32.xlu1 %v2365_v39, %s1848_s14  ;;  %819 = vrot.lane.b32.xlu0 %v2370_v29, %s1848_s14  ;;  %v774_v17 = vsel %vm713_vm1, %v772_v6, %v2686_v60  ;;  %v762_v55 = vsel %vm713_vm1, %v760_v54, %v2687_v62 }
  0x42   : > { %1451 = vst.msk [vmem:[%s2124_s19 + $0x18] sm:$0xff] %vm992_vm2, %v1443_v32  ;;  %v2403_v0 = vsel %vm713_vm1, %v735_v45, %v2678_v59  ;;  %1770 = vmatprep.subr.bf16.mxu0 %v1769_v63  ;;  %1777 = vmatprep.subr.bf16.mxu1 %v1769_v63 }
  0x43   : > { %1772 = vmatpush3.bf16.msra.mxu0 %v1769_v63  ;;  %1780 = vmatpush3.bf16.msra.mxu1 %v1769_v63 }
  0x45   : > { %905 = vrot.lane.b32.xlu1 %v771_v24, %s1851_s30  ;;  %897 = vrot.lane.b32.xlu0 %v759_v28, %s1851_s30 }
  0x49   : > { %927 = vrot.lane.b32.xlu1 %v1985_v15, %s1852_s22  ;;  %919 = vrot.lane.b32.xlu0 %v1982_v14, %s1852_s22 }
  0x4d   : > { %829 = vrot.lane.b32.xlu1 %v2403_v0, %s1848_s14  ;;  %821 = vrot.lane.b32.xlu0 %v2408_v36, %s1848_s14 }
  0x51   : > { %851 = vrot.lane.b32.xlu1 %v2217_v18, %s1849_s15  ;;  %843 = vrot.lane.b32.xlu0 %v2228_v2, %s1849_s15  ;;  %v2688_v18 = vld [vmem:[#allocation2_spill] sm:$0xff] }
  0x55   : > { %929 = vrot.lane.b32.xlu1 %v2101_v9, %s1852_s22  ;;  %921 = vrot.lane.b32.xlu0 %v2112_v19, %s1852_s22 }
  0x59   : > { %952 = vrot.lane.b32.xlu1 %v1972_v10, %s1853_s29  ;;  %944 = vrot.lane.b32.xlu0 %v1947_v3, %s1853_s29  ;;  %v1066_v3 = vld [vmem:[%s2643_s6 + $0x10] sm:$0xff]  ;;  %v1067_v10 = vld [vmem:[%s2643_s6 + $0x18] sm:$0xff] }
  0x5a   : > { %v1773_v22 = vpack.c.bf16 %v1067_v10, %v1066_v3 }
  0x5c   : > { %1774 = vmatprep.subr.bf16.mxu0 %v1773_v22  ;;  %1778 = vmatprep.subr.bf16.mxu1 %v1773_v22 }
  0x5d   : > { %853 = vrot.lane.b32.xlu1 %v2680_v50, %s1849_s15  ;;  %845 = vrot.lane.b32.xlu0 %v2681_v43, %s1849_s15 }
  0x5e   : > { %1776 = vmatpush3.bf16.msra.mxu0 %v1773_v22  ;;  %1781 = vmatpush3.bf16.msra.mxu1 %v1773_v22 }
  0x5f   : > { %1755 = vmatprep.subr.msk.mxu0 %vm1101_vm3, %v1068_v49  ;;  %1779 = vmatprep.subr.msk.mxu1 %vm1101_vm3, %v1068_v49 }
  0x61   : > { %883 = vrot.lane.b32.xlu1 %v2289_v48, %s1850_s23  ;;  %875 = vrot.lane.b32.xlu0 %v2310_v41, %s1850_s23  ;;  %v2684_v48 = vld [vmem:[#allocation5_spill] sm:$0xff]  ;;  %v2685_v41 = vld [vmem:[#allocation6_spill] sm:$0xff] }
  0x62   : > { %1756 = vmatpush3.msk.msra.mxu0 %vm1101_vm3, %v1068_v49  ;;  %1782 = vmatpush3.msk.msra.mxu1 %vm1101_vm3, %v1068_v49 }
  0x65   : > { %954 = vrot.lane.b32.xlu1 %v2682_v8, %s1853_s29  ;;  %946 = vrot.lane.b32.xlu0 %v2683_v27, %s1853_s29 }
  0x69   : > { %976 = vrot.lane.b32.xlu1 %v2684_v48, %s1854_s13  ;;  %968 = vrot.lane.b32.xlu0 %v2685_v41, %s1854_s13 }
  0x6d   : > { %885 = vrot.lane.b32.xlu1 %v2317_v57, %s1850_s23  ;;  %877 = vrot.lane.b32.xlu0 %v2326_v33, %s1850_s23 }
  0x71   : > { %907 = vrot.lane.b32.xlu1 %v774_v17, %s1851_s30  ;;  %899 = vrot.lane.b32.xlu0 %v762_v55, %s1851_s30 }
  0x75   : > { %978 = vrot.lane.b32.xlu1 %v2365_v39, %s1854_s13  ;;  %970 = vrot.lane.b32.xlu0 %v2370_v29, %s1854_s13 }
  0x79   : > { %909 = vrot.lane.b32.xlu1 %v2320_v31, %s1851_s30  ;;  %901 = vrot.lane.b32.xlu0 %v2329_v34, %s1851_s30 }
  0x7d   : > { %931 = vrot.lane.b32.xlu1 %v2152_v44, %s1852_s22  ;;  %923 = vrot.lane.b32.xlu0 %v2155_v20, %s1852_s22 }
  0x81   : > { %933 = vrot.lane.b32.xlu1 %v2303_v47, %s1852_s22  ;;  %925 = vrot.lane.b32.xlu0 %v2688_v18, %s1852_s22  ;;  %s636_s22 = scalar_lea.vmem %s2645_s8, %s2009_s26 }
  0x85   : > { %956 = vrot.lane.b32.xlu1 %v2164_v53, %s1853_s29  ;;  %948 = vrot.lane.b32.xlu0 %v2185_v4, %s1853_s29  ;;  %v2689_v53 = vld [vmem:[#allocation3_spill] sm:$0xff] }
  0x87   : > { %v794_v2 = vpop.permute.xlu1 %793  ;;  %v792_v40 = vpop.permute.xlu0 %791 }
  0x88   : > { %v993_v4 = vsel %vm992_vm2, %v2689_v53, %v792_v40  ;;  %v994_v35 = vsel %vm992_vm2, %v1982_v14, %v794_v2 }
  0x89   : > { %958 = vrot.lane.b32.xlu1 %v2352_v58, %s1853_s29  ;;  %950 = vrot.lane.b32.xlu0 %v1975_v11, %s1853_s29 }
  0x8b   : > { %v802_v7 = vpop.permute.xlu1 %801  ;;  %v800_v57 = vpop.permute.xlu0 %799 }
  0x8c   : > { %v997_v47 = vsel %vm992_vm2, %v2688_v18, %v800_v57  ;;  %v998_v21 = vsel %vm992_vm2, %v1985_v15, %v802_v7 }
  0x8d   : > { %980 = vrot.lane.b32.xlu1 %v2403_v0, %s1854_s13  ;;  %972 = vrot.lane.b32.xlu0 %v2408_v36, %s1854_s13 }
  0x8f   : > { %v824_v31 = vpop.permute.xlu1 %823  ;;  %v816_v33 = vpop.permute.xlu0 %815 }
  0x90   : > { %v1006_v34 = vsel %vm1001_vm4, %v997_v47, %v824_v31  ;;  %v1002_v11 = vsel %vm1001_vm4, %v993_v4, %v816_v33 }
  0x91   : > { %982 = vrot.lane.b32.xlu1 %v2345_v1, %s1854_s13  ;;  %974 = vrot.lane.b32.xlu0 %v2690_v23, %s1854_s13 }
  0x93   : > { %v826_v58 = vpop.permute.xlu1 %825  ;;  %v818_v30 = vpop.permute.xlu0 %817 }
  0x94   : > { %v1007_v37 = vsel %vm1001_vm4, %v998_v21, %v826_v58  ;;  %v1003_v12 = vsel %vm1001_vm4, %v994_v35, %v818_v30 }
  0x97   : > { %v848_v56 = vpop.permute.xlu1 %847  ;;  %v840_v16 = vpop.permute.xlu0 %839 }
  0x98   : > { %v1015_v54 = vsel %vm1010_vm5, %v1006_v34, %v848_v56  ;;  %v1011_v60 = vsel %vm1010_vm5, %v1002_v11, %v840_v16 }
  0x9b   : > { %v850_v39 = vpop.permute.xlu1 %849  ;;  %v842_v1 = vpop.permute.xlu0 %841 }
  0x9c   : > { %v2516_v13 = vsel %vm1010_vm5, %v1007_v37, %v850_v39  ;;  %v2519_v29 = vsel %vm1010_vm5, %v1003_v12, %v842_v1 }
  0x9f   : > { %v880_v14 = vpop.permute.xlu1 %879  ;;  %v872_v51 = vpop.permute.xlu0 %871 }
  0xa0   : > { %v1024_v55 = vsel %vm1019_vm6, %v1015_v54, %v880_v14  ;;  %v1020_v18 = vsel %vm1019_vm6, %v1011_v60, %v872_v51 }
  0xa3   : > { %v804_v15 = vpop.permute.xlu1 %803  ;;  %v796_v38 = vpop.permute.xlu0 %795 }
  0xa4   : > { %v999_v45 = vsel %vm992_vm2, %v2101_v9, %v804_v15  ;;  %v995_v52 = vsel %vm992_vm2, %v2112_v19, %v796_v38 }
  0xa7   : > { %v882_v61 = vpop.permute.xlu1 %881  ;;  %v874_v32 = vpop.permute.xlu0 %873 }
  0xa8   : > { %v1025_v58 = vsel %vm1019_vm6, %v2516_v13, %v882_v61  ;;  %v1021_v30 = vsel %vm1019_vm6, %v2519_v29, %v874_v32 }
  0xab   : > { %v904_v5 = vpop.permute.xlu1 %903  ;;  %v896_v24 = vpop.permute.xlu0 %895 }
  0xac   : > { %v1033_v2 = vsel %vm1028_vm7, %v1024_v55, %v904_v5  ;;  %v1029_v40 = vsel %vm1028_vm7, %v1020_v18, %v896_v24 }
  0xaf   : > { %v2521_v42 = vpop.permute.xlu1 %805  ;;  %v2523_v28 = vpop.permute.xlu0 %797 }
  0xb3   : > { %v828_v59 = vpop.permute.xlu1 %827  ;;  %v820_v0 = vpop.permute.xlu0 %819 }
  0xb4   : > { %v2530_v46 = vsel %vm1001_vm4, %v999_v45, %v828_v59  ;;  %v2533_v36 = vsel %vm1001_vm4, %v995_v52, %v820_v0 }
  0xb7   : > { %v906_v25 = vpop.permute.xlu1 %905  ;;  %v898_v26 = vpop.permute.xlu0 %897 }
  0xb8   : > { %v1034_v37 = vsel %vm1028_vm7, %v1025_v58, %v906_v25  ;;  %v1030_v12 = vsel %vm1028_vm7, %v1021_v30, %v898_v26 }
  0xbb   : > { %v928_v50 = vpop.permute.xlu1 %927  ;;  %v920_v43 = vpop.permute.xlu0 %919 }
  0xbc   : > { %v1042_v7 = vsel %vm1037_vm8, %v1033_v2, %v928_v50  ;;  %v1038_v57 = vsel %vm1037_vm8, %v1029_v40, %v920_v43 }
  0xbf   : > { %v2535_v63 = vpop.permute.xlu1 %829  ;;  %v2537_v3 = vpop.permute.xlu0 %821 }
  0xc3   : > { %v852_v9 = vpop.permute.xlu1 %851  ;;  %v844_v10 = vpop.permute.xlu0 %843 }
  0xc4   : > { %v1017_v59 = vsel %vm1010_vm5, %v2530_v46, %v852_v9  ;;  %v1013_v0 = vsel %vm1010_vm5, %v2533_v36, %v844_v10 }
  0xc7   : > { %v930_v22 = vpop.permute.xlu1 %929  ;;  %v922_v19 = vpop.permute.xlu0 %921 }
  0xc8   : > { %v1043_v56 = vsel %vm1037_vm8, %v1034_v37, %v930_v22  ;;  %v1039_v16 = vsel %vm1037_vm8, %v1030_v12, %v922_v19  ;;  %v1000_v22 = vsel %vm992_vm2, %v2152_v44, %v2521_v42  ;;  %v996_v19 = vsel %vm992_vm2, %v2155_v20, %v2523_v28 }
  0xc9   : > { %v1009_v36 = vsel %vm1001_vm4, %v1000_v22, %v2535_v63  ;;  %v1005_v9 = vsel %vm1001_vm4, %v996_v19, %v2537_v3 }
  0xcb   : > { %v953_v49 = vpop.permute.xlu1 %952  ;;  %v945_v8 = vpop.permute.xlu0 %944 }
  0xcc   : > { %v1051_v53 = vsel %vm1046_vm9, %v1042_v7, %v953_v49  ;;  %v1047_v4 = vsel %vm1046_vm9, %v1038_v57, %v945_v8 }
  0xcf   : > { %v2539_v27 = vpop.permute.xlu1 %853  ;;  %v2541_v48 = vpop.permute.xlu0 %845 }
  0xd0   : > { %v1018_v44 = vsel %vm1010_vm5, %v1009_v36, %v2539_v27  ;;  %v1014_v20 = vsel %vm1010_vm5, %v1005_v9, %v2541_v48 }
  0xd3   : > { %v884_v41 = vpop.permute.xlu1 %883  ;;  %v876_v6 = vpop.permute.xlu0 %875 }
  0xd4   : > { %v1026_v50 = vsel %vm1019_vm6, %v1017_v59, %v884_v41  ;;  %v1022_v43 = vsel %vm1019_vm6, %v1013_v0, %v876_v6 }
  0xd7   : > { %v955_v17 = vpop.permute.xlu1 %954  ;;  %v947_v62 = vpop.permute.xlu0 %946 }
  0xd8   : > { %v1052_v39 = vsel %vm1046_vm9, %v1043_v56, %v955_v17  ;;  %v1048_v1 = vsel %vm1046_vm9, %v1039_v16, %v947_v62 }
  0xdb   : > { %v977_v47 = vpop.permute.xlu1 %976  ;;  %v969_v31 = vpop.permute.xlu0 %968 }
  0xdc   : > { %v1056_v33 = vsel %vm1055_vm10, %v1047_v4, %v969_v31  ;;  %v1060_v34 = vsel %vm1055_vm10, %v1051_v53, %v977_v47  ;;  %v1714_v53 = vld [vmem:[%s2644_s7] ss:$0 sm:$0xff] }
  0xdd   : > { %1757 = vmatprep.mubr.msk.f32.mxu0 %vm1076_vm11, %v1056_v33  ;;  %1763 = vmatprep.mubr.msk.f32.mxu1 %vm1076_vm11, %v1060_v34 }
  0xdf   : > { %v886_v11 = vpop.permute.xlu1 %885  ;;  %v878_v23 = vpop.permute.xlu0 %877 }
  0xe0   : > { %v1027_v63 = vsel %vm1019_vm6, %v1018_v44, %v886_v11  ;;  %v1023_v3 = vsel %vm1019_vm6, %v1014_v20, %v878_v23 }
  0xe3   : > { %v908_v35 = vpop.permute.xlu1 %907  ;;  %v900_v21 = vpop.permute.xlu0 %899 }
  0xe4   : > { %v1035_v49 = vsel %vm1028_vm7, %v1026_v50, %v908_v35  ;;  %v1031_v46 = vsel %vm1028_vm7, %v1022_v43, %v900_v21 }
  0xe7   : > { %v979_v14 = vpop.permute.xlu1 %978  ;;  %v971_v51 = vpop.permute.xlu0 %970 }
  0xe8   : > { %v1061_v15 = vsel %vm1055_vm10, %v1052_v39, %v979_v14  ;;  %v1057_v13 = vsel %vm1055_vm10, %v1048_v1, %v971_v51 }
  0xe9   : > { %1758 = vmatmul.mubr.msk.f32.vlgmr.msra.gmra.mrb[0].mxu0 %vm1076_vm11, %v1057_v13  ;;  %1764 = vmatmul.mubr.msk.f32.vlgmr.msra.gmra.mrb[0].mxu1 %vm1076_vm11, %v1061_v15 }
  0xeb   : > { %v910_v29 = vpop.permute.xlu1 %909  ;;  %v902_v38 = vpop.permute.xlu0 %901 }
  0xec   : > { %v1036_v17 = vsel %vm1028_vm7, %v1027_v63, %v910_v29  ;;  %v1032_v27 = vsel %vm1028_vm7, %v1023_v3, %v902_v38 }
  0xef   : > { %v932_v61 = vpop.permute.xlu1 %931  ;;  %v924_v32 = vpop.permute.xlu0 %923 }
  0xf0   : > { %v1044_v10 = vsel %vm1037_vm8, %v1035_v49, %v932_v61  ;;  %v1040_v8 = vsel %vm1037_vm8, %v1031_v46, %v924_v32 }
  0xf3   : > { %v934_v5 = vpop.permute.xlu1 %933  ;;  %v926_v24 = vpop.permute.xlu0 %925 }
  0xf4   : > { %v1045_v48 = vsel %vm1037_vm8, %v1036_v17, %v934_v5  ;;  %v1041_v62 = vsel %vm1037_vm8, %v1032_v27, %v926_v24 }
  0xf7   : > { %v957_v45 = vpop.permute.xlu1 %956  ;;  %v949_v52 = vpop.permute.xlu0 %948 }
  0xf8   : > { %v1053_v42 = vsel %vm1046_vm9, %v1044_v10, %v957_v45  ;;  %v1049_v28 = vsel %vm1046_vm9, %v1040_v8, %v949_v52 }
  0xfb   : > { %v959_v25 = vpop.permute.xlu1 %958  ;;  %v951_v26 = vpop.permute.xlu0 %950 }
  0xfc   : > { %v1054_v55 = vsel %vm1046_vm9, %v1045_v48, %v959_v25  ;;  %v1050_v18 = vsel %vm1046_vm9, %v1041_v62, %v951_v26 }
  0xff   : > { %v981_v41 = vpop.permute.xlu1 %980  ;;  %v973_v6 = vpop.permute.xlu0 %972 }
 0x100   : > { %v1062_v54 = vsel %vm1055_vm10, %v1053_v42, %v981_v41  ;;  %v1058_v60 = vsel %vm1055_vm10, %v1049_v28, %v973_v6 }
 0x101   : > { %1760 = vmatprep.mubr.msk.f32.mxu0 %vm1076_vm11, %v1058_v60  ;;  %1766 = vmatprep.mubr.msk.f32.mxu1 %vm1076_vm11, %v1062_v54 }
 0x103   : > { %v983_v2 = vpop.permute.xlu1 %982  ;;  %v975_v40 = vpop.permute.xlu0 %974 }
 0x104   : > { %v1063_v7 = vsel %vm1055_vm10, %v1054_v55, %v983_v2  ;;  %v1059_v57 = vsel %vm1055_vm10, %v1050_v18, %v975_v40 }
 0x105   : > { %1761 = vmatmul.mubr.msk.f32.gmra.mrb[2].mxu0 %vm1076_vm11, %v1059_v57  ;;  %1767 = vmatmul.mubr.msk.f32.gmra.mrb[2].mxu1 %vm1076_vm11, %v1063_v7 }
 0x1bc   : > { %v1759_v4 = vpop.f32.mrb[0].mxu0  ;;  %v1765_v47 = vpop.f32.mrb[0].mxu1 }
 0x1bd   : > { %v1177_v31 = vadd.f32 %v1759_v4, %v1714_v53  ;;  %v1197_v33 = vadd.f32 %v1765_v47, %v1714_v53  ;;  %v1171_v34 = vpop.f32.mrb[1].mxu0  ;;  %v1191_v11 = vpop.f32.mrb[1].mxu1 }
 0x1be   : > { %v1172_v23 = vadd.f32 %v1714_v53, %v1171_v34  ;;  %v1192_v35 = vadd.f32 %v1714_v53, %v1191_v11 }
 0x1bf   : > { %v1211_v21 = vmax.f32 %v1177_v31, 0.0  ;;  %v1215_v58 = vmax.f32 %v1197_v33, 0.0 }
 0x1c0   : > { %v1210_v30 = vmax.f32 %v1172_v23, 0.0  ;;  %v1214_v37 = vmax.f32 %v1192_v35, 0.0 }
 0x1c1   : > { %1219 = vst.msk [vmem:[%s636_s22 + $0x8] sm:$0xff] %vm1001_vm4, %v1211_v21  ;;  %1223 = vst.msk [vmem:[%s636_s22 + $0x28] sm:$0xff] %vm1001_vm4, %v1215_v58 }
 0x1c2   : > { %1218 = vst.msk [vmem:[%s636_s22] sm:$0xff] %vm1001_vm4, %v1210_v30  ;;  %1222 = vst.msk [vmem:[%s636_s22 + $0x20] sm:$0xff] %vm1001_vm4, %v1214_v37 }
 0x1d8   : > { %v1762_v12 = vpop.f32.mrb[2].mxu0  ;;  %v1768_v56 = vpop.f32.mrb[2].mxu1 }
 0x1d9   : > { %v1187_v16 = vadd.f32 %v1762_v12, %v1714_v53  ;;  %v1207_v39 = vadd.f32 %v1768_v56, %v1714_v53  ;;  %v1181_v1 = vpop.f32.mrb[3].mxu0  ;;  %v1201_v14 = vpop.f32.mrb[3].mxu1 }
 0x1da   : > { %v1182_v51 = vadd.f32 %v1714_v53, %v1181_v1  ;;  %v1202_v15 = vadd.f32 %v1714_v53, %v1201_v14 }
 0x1db   : > { %v1213_v13 = vmax.f32 %v1187_v16, 0.0  ;;  %v1217_v29 = vmax.f32 %v1207_v39, 0.0 }
 0x1dc   : > { %v1212_v38 = vmax.f32 %v1182_v51, 0.0  ;;  %v1216_v61 = vmax.f32 %v1202_v15, 0.0 }
 0x1dd   : > { %1221 = vst.msk [vmem:[%s636_s22 + $0x18] sm:$0xff] %vm1001_vm4, %v1213_v13  ;;  %1225 = vst.msk [vmem:[%s636_s22 + $0x38] sm:$0xff] %vm1001_vm4, %v1217_v29 }
 0x1de   : > { %1220 = vst.msk [vmem:[%s636_s22 + $0x10] sm:$0xff] %vm1001_vm4, %v1212_v38  ;;  %1224 = vst.msk [vmem:[%s636_s22 + $0x30] sm:$0xff] %vm1001_vm4, %v1216_v61 }
 0x1df PF: > { %s20_s11 = sadd.s32 1, %s1844_s11   ;;  %s2691_s30 = smov %s1840_s10 }
 0x1e0   : > { %p17_p5 = scmp.ge.s32.totalorder %s20_s11, 4   ;;  %s2692_s10 = smov %s2694_s12 }
 0x1e2   :  { %19 = sbr.rel (!%p17_p5) target bundleno = 2 (0x2), region = 109 }

</bundles_post_ra>
